<compile_context>
chip_gen: v6e
topology: v6e:2x2x1
jax: 0.10.0
libtpu: 0.0.40
codegen_flags: <defaults>
</compile_context>

<pallas_src>
import functools

import jax
import jax.numpy as jnp
from jax.experimental import pallas as pl
from jax.experimental.pallas import tpu as pltpu


def _round_up(a: int, b: int) -> int:
    return (a + b - 1) // b * b


def _vmem_physical_bytes() -> int:
    """Per-TensorCore VMEM capacity; fall back to v7x's 64 MiB (the smallest)."""
    try:
        cap = getattr(pltpu.get_tpu_info(), "vmem_capacity_bytes", None)
        if cap:
            return int(cap)
    except Exception:
        pass
    return 64 * 1024 * 1024


def _softargmax2d_kernel(w_ref, x_ref, o_ref, *, beta: float):
    # w_ref: (HW, WCOLS) f32 -- col 0/1 = output coordinate weights (ordered for
    #         return_xy), col 2 = ones (softmax denominator), rest zero padding.
    # x_ref: (TILE_R, HW) heatmap rows, spatial axis flattened onto lanes.
    # o_ref: (TILE_R, 2)  soft-argmax output.
    z = x_ref[...].astype(jnp.float32) * beta

    # Numerically stable softmax numerator over the flattened spatial (lane) axis.
    m = jnp.max(z, axis=-1, keepdims=True)            # (TILE_R, 1)  XLU
    e = jnp.exp(z - m)                                # (TILE_R, HW) EUP

    # One MXU matmul fuses all three lane reductions; HIGHEST precision keeps
    # full f32 accuracy (default precision would truncate e to bf16 and exceed
    # the 1e-4 tolerance on coordinates of magnitude O(H, W)).
    r = jnp.dot(e, w_ref[...],
                preferred_element_type=jnp.float32,
                precision=jax.lax.Precision.HIGHEST)  # (TILE_R, WCOLS)

    # Exact divide on a (TILE_R, 1) slab (per review: no approx reciprocal here).
    inv = 1.0 / r[:, 2:3]
    o_ref[...] = (r[:, 0:2] * inv).astype(o_ref.dtype)


def soft_argmax_2d(heatmap: jax.Array, beta: float = 100.0,
                   return_xy: bool = False) -> jax.Array:
    """heatmap: (B, N, H, W) -> (B, N, 2) float32 soft-argmax coordinates."""
    B, N, H, W = heatmap.shape
    R, HW = B * N, H * W
    itemsize = jnp.dtype(heatmap.dtype).itemsize

    # Flatten so H*W is the lane dimension and B*N the sublane/row dimension.
    x = heatmap.reshape(R, HW)

    # ---- spatial weight matrix (precomputed; no in-kernel div/mod) ----------
    # 128 columns map cleanly onto the MXU; only drop to 8 columns if HW is so
    # large that the (HW, 128) weights would eat a meaningful slice of VMEM.
    w_cols = 128 if HW * 128 * 4 <= 4 * 1024 * 1024 else 8
    flat = jnp.arange(HW, dtype=jnp.int32)
    col_idx = (flat % W).astype(jnp.float32)          # -> approx_y  (yy)
    row_idx = (flat // W).astype(jnp.float32)         # -> approx_x  (xx)
    first, second = (row_idx, col_idx) if return_xy else (col_idx, row_idx)
    w = jnp.zeros((HW, w_cols), jnp.float32)
    w = w.at[:, 0].set(first).at[:, 1].set(second).at[:, 2].set(1.0)
    w_bytes = HW * w_cols * 4

    # ---- generation-aware VMEM budget and row tiling ------------------------
    vmem_phys = _vmem_physical_bytes()
    # ~40 MiB on v7x (64 MiB physical VMEM), ~80 MiB on v5e/v6e (128 MiB).
    vmem_limit = int(min(vmem_phys * 5 // 8, 80 * 1024 * 1024))
    # Per-row VMEM: 2 double-buffered input copies + ~2 f32 temporaries (z / e).
    bytes_per_row = HW * (2 * itemsize + 2 * 4)
    tile_budget = max(4 * 1024 * 1024, vmem_limit - 2 * w_bytes - 8 * 1024 * 1024)
    rows_cap = min(4096, max(8, (tile_budget // bytes_per_row) // 8 * 8))

    if R <= 8:
        tile_r = R                                    # single full-extent block
    else:
        # Keep >= 2 grid steps so v7x's two TensorCores both get work; the last
        # block may be ragged (Pallas masks OOB writes; pad-row reads discarded).
        tile_r = min(rows_cap, _round_up(pl.cdiv(R, 2), 8))
    grid = (pl.cdiv(R, tile_r),)

    cost = pl.CostEstimate(
        flops=R * HW * (3 + 2 * w_cols),
        transcendentals=R * HW,                       # one exp per element
        bytes_accessed=R * HW * itemsize + w_bytes + R * 2 * 4,
    )

    out = pl.pallas_call(
        functools.partial(_softargmax2d_kernel, beta=float(beta)),
        out_shape=jax.ShapeDtypeStruct((R, 2), jnp.float32),
        grid_spec=pltpu.PrefetchScalarGridSpec(
            num_scalar_prefetch=0,
            grid=grid,
            in_specs=[
                pl.BlockSpec((HW, w_cols), lambda r: (0, 0)),   # weights (revisited)
                pl.BlockSpec((tile_r, HW), lambda r: (r, 0)),   # heatmap rows
            ],
            out_specs=pl.BlockSpec((tile_r, 2), lambda r: (r, 0)),
        ),
        compiler_params=pltpu.CompilerParams(
            dimension_semantics=("parallel",),
            vmem_limit_bytes=vmem_limit,
        ),
        cost_estimate=cost,
    )(w, x)

    return out.reshape(B, N, 2)


def _reference(heatmap, beta=100.0, return_xy=False):
    B, N, H, W = heatmap.shape
    z = heatmap * beta
    p = jax.nn.softmax(z.reshape(B, N, H * W), axis=2).reshape(B, N, H, W)
    rows = jnp.arange(H, dtype=jnp.float32)[:, None]   # xx (height index)
    cols = jnp.arange(W, dtype=jnp.float32)[None, :]   # yy (width index)
    ax = jnp.sum(p * rows, axis=(2, 3))[..., None]
    ay = jnp.sum(p * cols, axis=(2, 3))[..., None]
    parts = [ax, ay] if return_xy else [ay, ax]
    return jnp.concatenate(parts, axis=2)


if __name__ == "__main__":
    key = jax.random.PRNGKey(0)

    # Primary shape from the module spec.
    B, N, H, W = 2, 4, 16, 16
    heatmap = jax.random.normal(key, (B, N, H, W), dtype=jnp.float32)

    out = jax.block_until_ready(soft_argmax_2d(heatmap, beta=100.0, return_xy=False))
    ref = _reference(heatmap, beta=100.0, return_xy=False)
    assert out.shape == (B, N, 2), out.shape
    assert jnp.allclose(out, ref, atol=1e-4, rtol=1e-4), (out, ref)

    out_xy = jax.block_until_ready(soft_argmax_2d(heatmap, beta=100.0, return_xy=True))
    ref_xy = _reference(heatmap, beta=100.0, return_xy=True)
    assert jnp.allclose(out_xy, ref_xy, atol=1e-4, rtol=1e-4), (out_xy, ref_xy)

    # Ragged-row case (R not a multiple of the tile): exercises the cdiv grid /
    # masked last block path that replaced the wrapper zero-pad copy.
    key2 = jax.random.PRNGKey(1)
    heatmap2 = jax.random.normal(key2, (3, 5, 16, 16), dtype=jnp.float32)
    out2 = jax.block_until_ready(soft_argmax_2d(heatmap2, beta=100.0, return_xy=False))
    ref2 = _reference(heatmap2, beta=100.0, return_xy=False)
    assert out2.shape == (3, 5, 2), out2.shape
    assert jnp.allclose(out2, ref2, atol=1e-4, rtol=1e-4), (out2, ref2)

    print("KERNEL_OK")
</pallas_src>

<mosaic_0001>
module attributes {stable_mosaic.version = 11 : i64} {
  func.func @_softargmax2d_kernel(%arg0: i32, %arg1: memref<256x128xf32, #tpu.memory_space<vmem>>, %arg2: memref<8x256xf32, #tpu.memory_space<vmem>>, %arg3: memref<8x2xf32, #tpu.memory_space<vmem>>) attributes {dimension_semantics = [#tpu.dimension_semantics<parallel>], iteration_bounds = array<i64: 1>, scalar_prefetch = 0 : i64, scratch_operands = 0 : i64, tpu.core_type = #tpu.core_type<tc>, window_params = [{pipeline_mode = #tpu.pipeline_mode<synchronous>, transform_indices = @transform_0, window_bounds = array<i64: 256, 128>}, {transform_indices = @transform_1, window_bounds = array<i64: 8, 256>}, {transform_indices = @transform_2, window_bounds = array<i64: 8, 2>}]} {
    %c0 = arith.constant 0 : index
    %c0_0 = arith.constant 0 : index
    %0 = vector.load %arg2[%c0, %c0_0] : memref<8x256xf32, #tpu.memory_space<vmem>>, vector<8x256xf32>
    %cst = arith.constant 1.000000e+02 : f32
    %1 = vector.broadcast %cst : f32 to vector<8x256xf32>
    %2 = arith.mulf %0, %1 : vector<8x256xf32>
    %cst_1 = arith.constant dense<0xFF800000> : vector<8xf32>
    %3 = vector.multi_reduction <maximumf>, %2, %cst_1 [1] : vector<8x256xf32> to vector<8xf32>
    %4 = vector.shape_cast %3 : vector<8xf32> to vector<8x1xf32>
    %5 = vector.broadcast %4 : vector<8x1xf32> to vector<8x256xf32>
    %6 = arith.subf %2, %5 : vector<8x256xf32>
    %7 = math.exp %6 : vector<8x256xf32>
    %c0_2 = arith.constant 0 : index
    %c0_3 = arith.constant 0 : index
    %8 = vector.load %arg1[%c0_2, %c0_3] : memref<256x128xf32, #tpu.memory_space<vmem>>, vector<256x128xf32>
    %cst_4 = arith.constant dense<0.000000e+00> : vector<8x128xf32>
    %9 = tpu.matmul %7, %8, %cst_4 {dimension_numbers = #tpu.dot_dimension_numbers<[1], [0], [0], [1], [0, 0, 1, 1], [], []>, precision = #tpu.contract_precision<fp32>} : vector<8x256xf32>, vector<256x128xf32>, vector<8x128xf32> -> vector<8x128xf32>
    %10 = vector.extract_strided_slice %9 {offsets = [0, 2], sizes = [8, 1], strides = [1, 1]} : vector<8x128xf32> to vector<8x1xf32>
    %cst_5 = arith.constant 1.000000e+00 : f32
    %11 = vector.broadcast %cst_5 : f32 to vector<8x1xf32>
    %12 = arith.divf %11, %10 : vector<8x1xf32>
    %13 = vector.extract_strided_slice %9 {offsets = [0, 0], sizes = [8, 2], strides = [1, 1]} : vector<8x128xf32> to vector<8x2xf32>
    %14 = vector.broadcast %12 : vector<8x1xf32> to vector<8x2xf32>
    %15 = arith.mulf %13, %14 : vector<8x2xf32>
    %c0_6 = arith.constant 0 : index
    %c0_7 = arith.constant 0 : index
    %16 = vector.load %arg3[%c0_6, %c0_7] : memref<8x2xf32, #tpu.memory_space<vmem>>, vector<8x2xf32>
    tpu.vector_store %arg3[%c0_6, %c0_7], %15 {strides = array<i32>} : memref<8x2xf32, #tpu.memory_space<vmem>>, vector<8x2xf32>,
    return
  }
  func.func @transform_0(%arg0: i32) -> (i32, i32) {
    %c0_i32 = arith.constant 0 : i32
    %c0_i32_0 = arith.constant 0 : i32
    %c0_i32_1 = arith.constant 0 : i32
    return %c0_i32, %c0_i32_0 : i32, i32
  }
  func.func @transform_1(%arg0: i32) -> (i32, i32) {
    %c0_i32 = arith.constant 0 : i32
    %c0_i32_0 = arith.constant 0 : i32
    return %arg0, %c0_i32 : i32, i32
  }
  func.func @transform_2(%arg0: i32) -> (i32, i32) {
    %c0_i32 = arith.constant 0 : i32
    %c0_i32_0 = arith.constant 0 : i32
    return %arg0, %c0_i32 : i32, i32
  }
}

</mosaic_0001>

<bundles_post_ra>
// kernel: tpu_custom_call.1
= control target key start
LH: loop header
LB: loop body
LE: loop exit
PB: predicated region body
PF: predicated region fallthrough
CT: control target
= control target key end

     0   :  { %7 = vsyncpa [#allocation3], 0  ;;  %s1764_s0 = inlined_call_operand.hbm [shape: f32[256,128], index: 0, kind: input, shape index: {}]   ;;  %s1765_s1 = inlined_call_operand.hbm [shape: f32[8,256], index: 1, kind: input, shape index: {}]   ;;  %s1766_s2 = inlined_call_operand.vmem [shape: f32[8,2], index: 2, kind: output, shape index: {}]  }
   0x1   :  { %8 = vsyncpa [#allocation5], 0  ;;  %s1226_s9 = smov [#allocation2]  }
   0x2   :  { %s14_s10 = sshll.u32 %s1226_s9, 4  ;;  %s15_s10 = int_to_ptr.vmem [resolvable:$true] %s14_s10 }
   0x3   :  { %s1190_s11 = scalar_lea.vmem %s15_s10, 4096  ;;  %p1195_p1 = scmp.lt.s32.totalorder %s15_s10, %s15_s10 }
   0x4   :  { %p1191_p0 = scmp.ne.s32.totalorder %s15_s10, %s1190_s11  ;;  %p1196_p2 = scmp.lt.s32.totalorder %s1190_s11, %s1190_s11 }
   0x6   :  { %p1197_p3 = por %p1196_p2, %p1195_p1 }
   0x8   :  { %p1198_p4 = pnand %p1197_p3, %p1191_p0 }
   0xa   :  { %1201 = shalt.err (!%p1198_p4)
}
   0xb   :  { %s1227_s12 = smov 128   ;;  %s1228_s13 = smov 8  }
   0xc   :  { %20 = dma.hbm_to_vmem [thread:$0]  %s1764_s0, 4096, %s15_s10, [#allocation3], %s1227_s12, %s1227_s12, %s1228_s13  }
   0xd   :  { %s1229_s16 = smov [#allocation4]  }
   0xe   :  { %s27_s17 = sshll.u32 %s1229_s16, 4  ;;  %s28_s17 = int_to_ptr.vmem [resolvable:$true] %s27_s17 }
   0xf   :  { %s1210_s18 = scalar_lea.vmem %s28_s17, 256  ;;  %p1215_p6 = scmp.lt.s32.totalorder %s28_s17, %s28_s17 }
  0x10   :  { %p1211_p5 = scmp.ne.s32.totalorder %s28_s17, %s1210_s18  ;;  %p1216_p7 = scmp.lt.s32.totalorder %s1210_s18, %s1210_s18 }
  0x12   :  { %p1217_p8 = por %p1216_p7, %p1215_p6 }
  0x14   :  { %p1218_p9 = pnand %p1217_p8, %p1211_p5 }
  0x16   :  { %1221 = shalt.err (!%p1218_p9)
}
  0x17   :  { %30 = dma.hbm_to_vmem [thread:$0]  %s1765_s1, 256, %s28_s17, [#allocation5]  }
  0x18   :  { %1222 = dma.done.wait [#allocation3], 4096  }
  0x19   :  { %1223 = vsyncadd [#allocation3], 4294963200 }
  0x1a   :  { %1224 = dma.done.wait [#allocation5], 256  }
  0x1b   :  { %1225 = vsyncadd [#allocation5], 4294967040  ;;  %v37_v0 = vld [vmem:[#allocation4] sm:$0xff]  ;;  %v38_v1 = vld [vmem:[#allocation4 + $0x8] sm:$0xff]  ;;  %vm952_vm0 = vcmask 15360  }
  0x1c   :  { %v81_v2 = vld [vmem:[#allocation2 + $0xf8] sm:$0xff]  ;;  %v1252_v3 = vmul.f32 100.0, %v37_v0  ;;  %v1254_v4 = vmul.f32 100.0, %v38_v1  ;;  %v80_v7 = vld [vmem:[#allocation2 + $0xf0] sm:$0xff]  ;;  %v79_v12 = vld [vmem:[#allocation2 + $0xe8] sm:$0xff] }
  0x1d   :  { %v1256_v5 = vand.u32 4294901760, %v81_v2  ;;  %v65_v6 = vld [vmem:[#allocation2 + $0x78] sm:$0xff]  ;;  %v64_v8 = vld [vmem:[#allocation2 + $0x70] sm:$0xff]  ;;  %v1260_v10 = vand.u32 4294901760, %v80_v7  ;;  %v63_v13 = vld [vmem:[#allocation2 + $0x68] sm:$0xff]  ;;  %v1269_v17 = vand.u32 4294901760, %v79_v12 }
  0x1e   :  { %v1258_v9 = vand.u32 4294901760, %v65_v6  ;;  %v1262_v11 = vand.u32 4294901760, %v64_v8  ;;  %v78_v14 = vld [vmem:[#allocation2 + $0xe0] sm:$0xff]  ;;  %v41_v15 = vmax.f32 %v1252_v3, %v1254_v4  ;;  %v1271_v18 = vand.u32 4294901760, %v63_v13  ;;  %v77_v40 = vld [vmem:[#allocation2 + $0xd8] sm:$0xff]  ;;  %v76_v46 = vld [vmem:[#allocation2 + $0xd0] sm:$0xff] }
  0x1f   :  { %v1267_v16 = vsub.f32 %v81_v2, %v1256_v5  ;;  %v62_v19 = vld [vmem:[#allocation2 + $0x60] sm:$0xff]  ;;  %960 = vmatprep.subr.mxu0 %v1256_v5  ;;  %v1278_v21 = vsub.f32 %v80_v7, %v1260_v10  ;;  %v1283_v23 = vand.u32 4294901760, %v78_v14  ;;  %v1288_v25 = vsub.f32 %v79_v12, %v1269_v17  ;;  %v61_v45 = vld [vmem:[#allocation2 + $0x58] sm:$0xff]  ;;  %v60_v47 = vld [vmem:[#allocation2 + $0x50] sm:$0xff] }
  0x20   :  { %v1275_v20 = vsub.f32 %v65_v6, %v1258_v9  ;;  %v1281_v22 = vsub.f32 %v64_v8, %v1262_v11  ;;  %961 = vmatpush3.msra.mxu0 %v1258_v9  ;;  %42 = vmax.xlane.f32.xlu0 %v41_v15  ;;  %v1291_v26 = vsub.f32 %v63_v13, %v1271_v18  ;;  %v1293_v27 = vand.u32 4294901760, %v62_v19  ;;  %v75_v52 = vld [vmem:[#allocation2 + $0xc8] sm:$0xff]  ;;  %v74_v58 = vld [vmem:[#allocation2 + $0xc0] sm:$0xff] }
  0x21   :  { %v1785_v24 = vand.u32 4294901760, %v1267_v16  ;;  %962 = vmatprep.subr.mxu0 %v1260_v10  ;;  %v1781_v29 = vand.u32 4294901760, %v1278_v21  ;;  %v1300_v31 = vsub.f32 %v78_v14, %v1283_v23  ;;  %v1778_v33 = vand.u32 4294901760, %v1288_v25  ;;  %v59_v53 = vld [vmem:[#allocation2 + $0x48] sm:$0xff]  ;;  %v58_v63 = vld [vmem:[#allocation2 + $0x40] sm:$0xff] }
  0x22   :  { %v1782_v28 = vand.u32 4294901760, %v1275_v20  ;;  %v1779_v30 = vand.u32 4294901760, %v1281_v22  ;;  %963 = vmatpush3.msra.mxu0 %v1262_v11  ;;  %v1777_v34 = vand.u32 4294901760, %v1291_v26  ;;  %v1309_v35 = vsub.f32 %v62_v19, %v1293_v27 }
  0x23   :  { %v310_v32 = vsub.f32 %v1267_v16, %v1785_v24  ;;  %964 = vmatprep.subr.mxu0 %v1269_v17  ;;  %v317_v37 = vsub.f32 %v1278_v21, %v1781_v29  ;;  %v1775_v39 = vand.u32 4294901760, %v1300_v31  ;;  %v324_v42 = vsub.f32 %v1288_v25, %v1778_v33  ;;  %v53_v24 = vld [vmem:[#allocation2 + $0x18] sm:$0xff] }
  0x24   :  { %v198_v36 = vsub.f32 %v1275_v20, %v1782_v28  ;;  %v205_v38 = vsub.f32 %v1281_v22, %v1779_v30  ;;  %965 = vmatpush3.msra.mxu0 %v1271_v18  ;;  %v212_v43 = vsub.f32 %v1291_v26, %v1777_v34  ;;  %v1773_v44 = vand.u32 4294901760, %v1309_v35  ;;  %v69_v28 = vld [vmem:[#allocation2 + $0x98] sm:$0xff] }
  0x25   :  { %v311_v41 = vand.u32 4294901760, %v310_v32  ;;  %966 = vmatprep.subr.mxu0 %v1283_v23  ;;  %v318_v49 = vand.u32 4294901760, %v317_v37  ;;  %v331_v51 = vsub.f32 %v1300_v31, %v1775_v39  ;;  %v325_v54 = vand.u32 4294901760, %v324_v42  ;;  %v54_v39 = vld [vmem:[#allocation2 + $0x20] sm:$0xff] }
  0x26   :  { %v199_v48 = vand.u32 4294901760, %v198_v36  ;;  %v206_v50 = vand.u32 4294901760, %v205_v38  ;;  %967 = vmatpush3.msra.mxu0 %v1293_v27  ;;  %v213_v55 = vand.u32 4294901760, %v212_v43  ;;  %v219_v56 = vsub.f32 %v1309_v35, %v1773_v44 }
  0x27   :  { %995 = vmatprep.subr.mxu1 %v311_v41  ;;  %v1338_v57 = vand.u32 4294901760, %v77_v40  ;;  %v332_v59 = vand.u32 4294901760, %v331_v51  ;;  %v1340_v60 = vand.u32 4294901760, %v61_v45  ;;  %v1342_v61 = vand.u32 4294901760, %v76_v46 }
  0x28   :  { %996 = vmatpush3.msra.mxu1 %v199_v48  ;;  %v1344_v62 = vand.u32 4294901760, %v60_v47  ;;  %v220_v0 = vand.u32 4294901760, %v219_v56  ;;  %v1349_v2 = vand.u32 4294901760, %v75_v52  ;;  %v1351_v6 = vand.u32 4294901760, %v59_v53  ;;  %v72_v56 = vld [vmem:[#allocation2 + $0xb0] sm:$0xff] }
  0x29   :  { %997 = vmatprep.subr.mxu1 %v318_v49  ;;  %v1347_v1 = vsub.f32 %v77_v40, %v1338_v57  ;;  %968 = vmatprep.subr.mxu0 %v1338_v57  ;;  %v1355_v7 = vsub.f32 %v61_v45, %v1340_v60  ;;  %v1358_v8 = vsub.f32 %v76_v46, %v1342_v61  ;;  %v1363_v13 = vand.u32 4294901760, %v74_v58 }
  0x2a   :  { %998 = vmatpush3.msra.mxu1 %v206_v50  ;;  %v1361_v12 = vsub.f32 %v60_v47, %v1344_v62  ;;  %969 = vmatpush3.msra.mxu0 %v1340_v60  ;;  %v1368_v15 = vsub.f32 %v75_v52, %v1349_v2  ;;  %v1371_v19 = vsub.f32 %v59_v53, %v1351_v6  ;;  %v1373_v32 = vand.u32 4294901760, %v58_v63  ;;  %v73_v50 = vld [vmem:[#allocation2 + $0xb8] sm:$0xff] }
  0x2b   :  { %999 = vmatprep.subr.mxu1 %v325_v54  ;;  %v1772_v14 = vand.u32 4294901760, %v1347_v1  ;;  %970 = vmatprep.subr.mxu0 %v1342_v61  ;;  %v1771_v36 = vand.u32 4294901760, %v1355_v7  ;;  %v1770_v37 = vand.u32 4294901760, %v1358_v8  ;;  %v1380_v40 = vsub.f32 %v74_v58, %v1363_v13  ;;  %v56_v58 = vld [vmem:[#allocation2 + $0x30] sm:$0xff] }
  0x2c   :  { %1000 = vmatpush3.msra.mxu1 %v213_v55  ;;  %v1767_v38 = vand.u32 4294901760, %v1361_v12  ;;  %971 = vmatpush3.msra.mxu0 %v1344_v62  ;;  %v1768_v42 = vand.u32 4294901760, %v1368_v15  ;;  %v1769_v43 = vand.u32 4294901760, %v1371_v19  ;;  %v1389_v45 = vsub.f32 %v58_v63, %v1373_v32  ;;  %v57_v55 = vld [vmem:[#allocation2 + $0x38] sm:$0xff] }
  0x2d   :  { %1831 = vst [vmem:[#allocation8_spill] sm:$0xff] %v1380_v40  ;;  %1001 = vmatprep.subr.mxu1 %v332_v59  ;;  %v338_v41 = vsub.f32 %v1347_v1, %v1772_v14  ;;  %972 = vmatprep.subr.mxu0 %v1349_v2  ;;  %v226_v46 = vsub.f32 %v1355_v7, %v1771_v36  ;;  %v1774_v49 = vand.u32 4294901760, %v1380_v40  ;;  %v1418_v14 = vand.u32 4294901760, %v73_v50 }
  0x2e   :  { %1832 = vst [vmem:[#allocation9_spill] sm:$0xff] %v1389_v45  ;;  %1002 = vmatpush3.msra.mxu1 %v220_v0  ;;  %v345_v47 = vsub.f32 %v1358_v8, %v1770_v37  ;;  %v233_v48 = vsub.f32 %v1361_v12, %v1767_v38  ;;  %973 = vmatpush3.msra.mxu0 %v1351_v6  ;;  %v1776_v54 = vand.u32 4294901760, %v1389_v45  ;;  %v71_v38 = vld [vmem:[#allocation2 + $0xa8] sm:$0xff]  ;;  %v1422_v44 = vand.u32 4294901760, %v72_v56 }
  0x2f   :  { %v339_v51 = vand.u32 4294901760, %v338_v41  ;;  %v352_v52 = vsub.f32 %v1368_v15, %v1768_v42  ;;  %v240_v53 = vsub.f32 %v1371_v19, %v1769_v43  ;;  %974 = vmatprep.subr.mxu0 %v1363_v13  ;;  %v227_v59 = vand.u32 4294901760, %v226_v46  ;;  %v55_v42 = vld [vmem:[#allocation2 + $0x28] sm:$0xff]  ;;  %v70_v46 = vld [vmem:[#allocation2 + $0xa0] sm:$0xff] }
  0x30   :  { %v346_v63 = vand.u32 4294901760, %v345_v47  ;;  %v234_v0 = vand.u32 4294901760, %v233_v48  ;;  %v359_v41 = vsub.f32 %v1380_v40, %v1774_v49  ;;  %975 = vmatpush3.msra.mxu0 %v1373_v32  ;;  %v247_v36 = vsub.f32 %v1389_v45, %v1776_v54  ;;  %v67_v45 = vld [vmem:[#allocation2 + $0x88] sm:$0xff] }
  0x31   :  { %1003 = vmatprep.subr.mxu1 %v339_v51  ;;  %v353_v43 = vand.u32 4294901760, %v352_v52  ;;  %v241_v37 = vand.u32 4294901760, %v240_v53  ;;  %v1420_v48 = vand.u32 4294901760, %v57_v55  ;;  %v1424_v49 = vand.u32 4294901760, %v56_v58  ;;  %976 = vmatprep.subr.mxu0 %v1418_v14 }
  0x32   :  { %1004 = vmatpush3.msra.mxu1 %v227_v59  ;;  %v360_v47 = vand.u32 4294901760, %v359_v41  ;;  %v248_v51 = vand.u32 4294901760, %v247_v36  ;;  %v1427_v52 = vsub.f32 %v73_v50, %v1418_v14  ;;  %v1429_v53 = vand.u32 4294901760, %v71_v38 }
  0x33   :  { %1005 = vmatprep.subr.mxu1 %v346_v63  ;;  %v1431_v54 = vand.u32 4294901760, %v55_v42  ;;  %v1435_v59 = vsub.f32 %v57_v55, %v1420_v48  ;;  %v1438_v41 = vsub.f32 %v72_v56, %v1422_v44  ;;  %v1441_v34 = vsub.f32 %v56_v58, %v1424_v49  ;;  %977 = vmatpush3.msra.mxu0 %v1420_v48 }
  0x34   :  { %1833 = vst [vmem:[#allocation10_spill] sm:$0xff] %v1427_v52  ;;  %1006 = vmatpush3.msra.mxu1 %v234_v0  ;;  %v1443_v36 = vand.u32 4294901760, %v70_v46  ;;  %v1780_v50 = vand.u32 4294901760, %v1427_v52  ;;  %v1448_v63 = vsub.f32 %v71_v38, %v1429_v53  ;;  %v1453_v55 = vand.u32 4294901760, %v54_v39  ;;  %978 = vmatprep.subr.mxu0 %v1422_v44 }
  0x35   :  { %1834 = vst [vmem:[#allocation11_spill] sm:$0xff] %v1435_v59  ;;  %1835 = vst [vmem:[#allocation12_spill] sm:$0xff] %v1438_v41  ;;  %1007 = vmatprep.subr.mxu1 %v353_v43  ;;  %v1451_v0 = vsub.f32 %v55_v42, %v1431_v54  ;;  %v1783_v56 = vand.u32 4294901760, %v1435_v59  ;;  %v1784_v58 = vand.u32 4294901760, %v1438_v41  ;;  %v1790_v33 = vand.u32 4294901760, %v1441_v34  ;;  %979 = vmatpush3.msra.mxu0 %v1424_v49 }
  0x36   :  { %1836 = vst [vmem:[#allocation13_spill] sm:$0xff] %v1441_v34  ;;  %1837 = vst [vmem:[#allocation14_spill] sm:$0xff] %v1443_v36  ;;  %1008 = vmatpush3.msra.mxu1 %v241_v37  ;;  %v1460_v43 = vsub.f32 %v70_v46, %v1443_v36  ;;  %v366_v38 = vsub.f32 %v1427_v52, %v1780_v50  ;;  %v1797_v42 = vand.u32 4294901760, %v1448_v63  ;;  %980 = vmatprep.subr.mxu0 %v1429_v53 }
  0x37   :  { %1838 = vst [vmem:[#allocation15_spill] sm:$0xff] %v1448_v63  ;;  %1839 = vst [vmem:[#allocation16_spill] sm:$0xff] %v1451_v0  ;;  %1009 = vmatprep.subr.mxu1 %v360_v47  ;;  %v1798_v37 = vand.u32 4294901760, %v1451_v0  ;;  %v1469_v30 = vsub.f32 %v54_v39, %v1453_v55  ;;  %v254_v46 = vsub.f32 %v1435_v59, %v1783_v56  ;;  %981 = vmatpush3.msra.mxu0 %v1431_v54  ;;  %v52_v59 = vld [vmem:[#allocation2 + $0x10] sm:$0xff] }
  0x38   :  { %1840 = vst [vmem:[#allocation17_spill] sm:$0xff] %v1460_v43  ;;  %1010 = vmatpush3.msra.mxu1 %v248_v51  ;;  %v373_v47 = vsub.f32 %v1438_v41, %v1784_v58  ;;  %v261_v50 = vsub.f32 %v1441_v34, %v1790_v33  ;;  %v367_v39 = vand.u32 4294901760, %v366_v38  ;;  %v380_v51 = vsub.f32 %v1448_v63, %v1797_v42  ;;  %v68_v41 = vld [vmem:[#allocation2 + $0x90] sm:$0xff]  ;;  %v51_v42 = vld [vmem:[#allocation2 + $0x8] sm:$0xff] }
  0x39   :  { %1841 = vst [vmem:[#allocation18_spill] sm:$0xff] %v1469_v30  ;;  %v268_v56 = vsub.f32 %v1451_v0, %v1798_v37  ;;  %v1809_v58 = vand.u32 4294901760, %v1469_v30  ;;  %982 = vmatprep.subr.mxu0 %v1443_v36  ;;  %v255_v33 = vand.u32 4294901760, %v254_v46  ;;  %v1842_v38 = vand.u32 4294901760, %v1460_v43  ;;  %v66_v46 = vld [vmem:[#allocation2 + $0x80] sm:$0xff] }
  0x3a   :  { %v374_v29 = vand.u32 4294901760, %v373_v47  ;;  %v262_v34 = vand.u32 4294901760, %v261_v50  ;;  %983 = vmatpush3.msra.mxu0 %v1453_v55  ;;  %1011 = vmatprep.subr.mxu1 %v367_v39  ;;  %v381_v37 = vand.u32 4294901760, %v380_v51  ;;  %v1498_v40 = vand.u32 4294901760, %v69_v28 }
  0x3b   :  { %v387_v52 = vsub.f32 %v1460_v43, %v1842_v38  ;;  %v269_v0 = vand.u32 4294901760, %v268_v56  ;;  %v275_v63 = vsub.f32 %v1469_v30, %v1809_v58  ;;  %1012 = vmatpush3.msra.mxu1 %v255_v33  ;;  %v1500_v47 = vand.u32 4294901760, %v53_v24  ;;  %v50_v43 = vld [vmem:[#allocation2] sm:$0xff] }
  0x3c   :  { %v1502_v36 = vand.u32 4294901760, %v68_v41  ;;  %v1504_v38 = vand.u32 4294901760, %v52_v59  ;;  %1013 = vmatprep.subr.mxu1 %v374_v29  ;;  %v1507_v56 = vsub.f32 %v69_v28, %v1498_v40  ;;  %v1509_v51 = vand.u32 4294901760, %v67_v45  ;;  %984 = vmatprep.subr.mxu0 %v1498_v40 }
  0x3d   :  { %v388_v50 = vand.u32 4294901760, %v387_v52  ;;  %1843 = vst [vmem:[#allocation19_spill] sm:$0xff] %v1500_v47  ;;  %v276_v39 = vand.u32 4294901760, %v275_v63  ;;  %v1511_v58 = vand.u32 4294901760, %v51_v42  ;;  %1014 = vmatpush3.msra.mxu1 %v262_v34  ;;  %v1515_v33 = vsub.f32 %v53_v24, %v1500_v47  ;;  %985 = vmatpush3.msra.mxu0 %v1500_v47 }
  0x3e   :  { %1844 = vst [vmem:[#allocation20_spill] sm:$0xff] %v1507_v56  ;;  %1845 = vst [vmem:[#allocation21_spill] sm:$0xff] %v1509_v51  ;;  %v1518_v52 = vsub.f32 %v68_v41, %v1502_v36  ;;  %v1521_v30 = vsub.f32 %v52_v59, %v1504_v38  ;;  %v1523_v29 = vand.u32 4294901760, %v66_v46  ;;  %1015 = vmatprep.subr.mxu1 %v381_v37  ;;  %v1814_v28 = vand.u32 4294901760, %v1507_v56 }
  0x3f   :  { %1846 = vst [vmem:[#allocation22_spill] sm:$0xff] %v1515_v33  ;;  %v1528_v63 = vsub.f32 %v67_v45, %v1509_v51  ;;  %v1531_v34 = vsub.f32 %v51_v42, %v1511_v58  ;;  %v1533_v24 = vand.u32 4294901760, %v50_v43  ;;  %986 = vmatprep.subr.mxu0 %v1502_v36  ;;  %1016 = vmatpush3.msra.mxu1 %v269_v0 }
  0x40   :  { %1847 = vst [vmem:[#allocation23_spill] sm:$0xff] %v1518_v52  ;;  %1848 = vst [vmem:[#allocation24_spill] sm:$0xff] %v1521_v30  ;;  %v1821_v41 = vand.u32 4294901760, %v1518_v52  ;;  %v1540_v37 = vsub.f32 %v66_v46, %v1523_v29  ;;  %987 = vmatpush3.msra.mxu0 %v1504_v38  ;;  %1017 = vmatprep.subr.mxu1 %v388_v50  ;;  %v394_v45 = vsub.f32 %v1507_v56, %v1814_v28 }
  0x41   :  { %v1549_v59 = vsub.f32 %v50_v43, %v1533_v24  ;;  %988 = vmatprep.subr.mxu0 %v1509_v51  ;;  %1018 = vmatpush3.msra.mxu1 %v276_v39  ;;  %v1849_v46 = vand.u32 4294901760, %v1515_v33  ;;  %v1850_v28 = vand.u32 4294901760, %v1521_v30  ;;  %v1851_v56 = vand.u32 4294901760, %v1528_v63 }
  0x42   :  { %v401_v50 = vsub.f32 %v1518_v52, %v1821_v41  ;;  %v1827_v0 = vand.u32 4294901760, %v1540_v37  ;;  %989 = vmatpush3.msra.mxu0 %v1511_v58  ;;  %v395_v43 = vand.u32 4294901760, %v394_v45  ;;  %v1852_v51 = vand.u32 4294901760, %v1531_v34 }
  0x43   :  { %v282_v47 = vsub.f32 %v1515_v33, %v1849_v46  ;;  %v289_v42 = vsub.f32 %v1521_v30, %v1850_v28  ;;  %v408_v39 = vsub.f32 %v1528_v63, %v1851_v56  ;;  %v1826_v33 = vand.u32 4294901760, %v1549_v59  ;;  %990 = vmatprep.subr.mxu0 %v1523_v29 }
  0x44   :  { %v296_v46 = vsub.f32 %v1531_v34, %v1852_v51  ;;  %v402_v52 = vand.u32 4294901760, %v401_v50  ;;  %v415_v30 = vsub.f32 %v1540_v37, %v1827_v0  ;;  %991 = vmatpush3.msra.mxu0 %v1533_v24  ;;  %1019 = vmatprep.subr.mxu1 %v395_v43 }
  0x45   :  { %v283_v41 = vand.u32 4294901760, %v282_v47  ;;  %v290_v28 = vand.u32 4294901760, %v289_v42  ;;  %v409_v45 = vand.u32 4294901760, %v408_v39  ;;  %v303_v56 = vsub.f32 %v1549_v59, %v1826_v33  ;;  %1030 = vmatprep.subr.mxu0 %v1267_v16 }
  0x46   :  { %v297_v51 = vand.u32 4294901760, %v296_v46  ;;  %v416_v47 = vand.u32 4294901760, %v415_v30 }
  0x47   :  { %1020 = vmatpush3.msra.mxu1 %v283_v41  ;;  %v304_v42 = vand.u32 4294901760, %v303_v56 }
  0x48   :  { %1021 = vmatprep.subr.mxu1 %v402_v52 }
  0x49   :  { %1022 = vmatpush3.msra.mxu1 %v290_v28 }
  0x4a   :  { %1023 = vmatprep.subr.mxu1 %v409_v45 }
  0x4b   :  { %1024 = vmatpush3.msra.mxu1 %v297_v51 }
  0x4c   :  { %1025 = vmatprep.subr.mxu1 %v416_v47  ;;  %v1854_v47 = vld [vmem:[#allocation8_spill] sm:$0xff] }
  0x4d   :  { %1026 = vmatpush3.msra.mxu1 %v304_v42  ;;  %v1855_v42 = vld [vmem:[#allocation14_spill] sm:$0xff] }
  0x4e   :  { %1065 = vmatprep.subr.mxu1 %v1256_v5 }
  0xa9   :  { %v43_v50 = vpop.xlane.xlu0 %42 }
  0xaa   :  { %v44_v43 = vsub.f32 %v1252_v3, %v43_v50  ;;  %v45_v39 = vsub.f32 %v1254_v4, %v43_v50  ;;  %v1856_v50 = vld [vmem:[#allocation9_spill] sm:$0xff] }
  0xac   :  { %v46_v33 = vmul.f32 1.442695, %v44_v43  ;;  %v48_v0 = vmul.f32 1.442695, %v45_v39  ;;  %v1857_v43 = vld [vmem:[#allocation10_spill] sm:$0xff]  ;;  %v1858_v39 = vld [vmem:[#allocation11_spill] sm:$0xff] }
  0xae   :  { %1176 = vpow2.f32 %v46_v33 }
  0xaf   :  { %1178 = vpow2.f32 %v48_v0 }
  0xbb   :  { %v1177_v41 = vpop.eup %1176 }
  0xbc   :  { %v1179_v52 = vpop.eup %1178  ;;  %v1582_v30 = vand.u32 4294901760, %v1177_v41 }
  0xbd   :  { %v1584_v46 = vand.u32 4294901760, %v1179_v52 }
  0xbe   :  { %1853 = vst [vmem:[#allocation25_spill] sm:$0xff] %v1582_v30  ;;  %v1587_v28 = vsub.f32 %v1177_v41, %v1582_v30  ;;  %v1859_v41 = vld [vmem:[#allocation19_spill] sm:$0xff] }
  0xbf   :  { %419 = vmatprep.mubr.f32.mxu1 %v1584_v46  ;;  %v179_v45 = vsub.f32 %v1179_v52, %v1584_v46  ;;  %v1860_v52 = vld [vmem:[#allocation12_spill] sm:$0xff] }
  0xc0   :  { %421 = vmatmul.mubr.f32.vlgmr.msra.gmra.mxu1 %v1582_v30  ;;  %v1828_v3 = vand.u32 4294901760, %v1587_v28  ;;  %v1868_v30 = vand.u32 4294901760, %v1587_v28 }
  0xc1   :  { %1066 = vmatpush3.msra.mxu1 %v1258_v9  ;;  %v180_v4 = vand.u32 4294901760, %v179_v45 }
  0xc2   :  { %1067 = vmatprep.subr.mxu1 %v1260_v10  ;;  %v187_v33 = vsub.f32 %v1587_v28, %v1828_v3  ;;  %v1867_v3 = vld [vmem:[#allocation20_spill] sm:$0xff] }
  0xc3   :  { %1068 = vmatpush3.msra.mxu1 %v1262_v11  ;;  %663 = vmatprep.mubr.f32.mxu1 %v180_v4  ;;  %v181_v0 = vsub.f32 %v179_v45, %v180_v4  ;;  %v1862_v4 = vld [vmem:[#allocation15_spill] sm:$0xff] }
  0xc4   :  { %1069 = vmatprep.subr.mxu1 %v1269_v17  ;;  %v188_v56 = vand.u32 4294901760, %v187_v33  ;;  %v1863_v33 = vld [vmem:[#allocation21_spill] sm:$0xff] }
  0xc5   :  { %1070 = vmatpush3.msra.mxu1 %v1271_v18  ;;  %v182_v51 = vand.u32 4294901760, %v181_v0  ;;  %v1864_v0 = vld [vmem:[#allocation16_spill] sm:$0xff] }
  0xc6   :  { %1071 = vmatprep.subr.mxu1 %v1283_v23 }
  0xc7   :  { %1072 = vmatpush3.msra.mxu1 %v1293_v27  ;;  %183 = vmatprep.mubr.f32.mxu0 %v182_v51  ;;  %v1866_v51 = vld [vmem:[#allocation18_spill] sm:$0xff] }
  0xc8   :  { %1073 = vmatprep.subr.mxu1 %v1338_v57  ;;  %189 = vmatmul.mubr.f32.vlgmr.msra.gmra.mxu0 %v188_v56  ;;  %v1865_v56 = vld [vmem:[#allocation17_spill] sm:$0xff] }
  0xc9   :  { %1031 = vmatpush3.msra.mxu0 %v1275_v20  ;;  %1074 = vmatpush3.msra.mxu1 %v1340_v60 }
  0xca   :  { %1032 = vmatprep.subr.mxu0 %v1278_v21  ;;  %556 = vmatprep.mubr.f32.mxu0 %v179_v45  ;;  %v1861_v45 = vld [vmem:[#allocation13_spill] sm:$0xff] }
  0xcb   :  { %1075 = vmatprep.subr.mxu1 %v1342_v61  ;;  %1033 = vmatpush3.msra.mxu0 %v1281_v22 }
  0xcc   :  { %1076 = vmatpush3.msra.mxu1 %v1344_v62  ;;  %1034 = vmatprep.subr.mxu0 %v1288_v25 }
  0xcd   :  { %1077 = vmatprep.subr.mxu1 %v1349_v2  ;;  %1035 = vmatpush3.msra.mxu0 %v1291_v26 }
  0xce   :  { %1078 = vmatpush3.msra.mxu1 %v1351_v6  ;;  %1036 = vmatprep.subr.mxu0 %v1300_v31 }
  0xcf   :  { %1079 = vmatprep.subr.mxu1 %v1363_v13  ;;  %1037 = vmatpush3.msra.mxu0 %v1309_v35 }
  0xd0   :  { %1080 = vmatpush3.msra.mxu1 %v1373_v32  ;;  %1038 = vmatprep.subr.mxu0 %v1347_v1 }
  0xd1   :  { %1081 = vmatprep.subr.mxu1 %v1418_v14  ;;  %1039 = vmatpush3.msra.mxu0 %v1355_v7 }
  0xd2   :  { %1082 = vmatpush3.msra.mxu1 %v1420_v48  ;;  %1040 = vmatprep.subr.mxu0 %v1358_v8 }
  0xd3   :  { %1083 = vmatprep.subr.mxu1 %v1422_v44  ;;  %1041 = vmatpush3.msra.mxu0 %v1361_v12 }
  0xd4   :  { %1084 = vmatpush3.msra.mxu1 %v1424_v49  ;;  %1042 = vmatprep.subr.mxu0 %v1368_v15 }
  0xd5   :  { %1085 = vmatprep.subr.mxu1 %v1429_v53  ;;  %1043 = vmatpush3.msra.mxu0 %v1371_v19 }
  0xd6   :  { %1086 = vmatpush3.msra.mxu1 %v1431_v54  ;;  %1044 = vmatprep.subr.mxu0 %v1854_v47 }
  0xd7   :  { %1087 = vmatprep.subr.mxu1 %v1855_v42  ;;  %1045 = vmatpush3.msra.mxu0 %v1856_v50 }
  0xd8   :  { %1088 = vmatpush3.msra.mxu1 %v1453_v55  ;;  %1046 = vmatprep.subr.mxu0 %v1857_v43 }
  0xd9   :  { %1089 = vmatprep.subr.mxu1 %v1498_v40  ;;  %1047 = vmatpush3.msra.mxu0 %v1858_v39 }
  0xda   :  { %1090 = vmatpush3.msra.mxu1 %v1859_v41  ;;  %1048 = vmatprep.subr.mxu0 %v1860_v52 }
  0xdb   :  { %1091 = vmatprep.subr.mxu1 %v1502_v36  ;;  %1049 = vmatpush3.msra.mxu0 %v1861_v45 }
  0xdc   :  { %1092 = vmatpush3.msra.mxu1 %v1504_v38  ;;  %1050 = vmatprep.subr.mxu0 %v1862_v4 }
  0xdd   :  { %1093 = vmatprep.subr.mxu1 %v1863_v33  ;;  %1051 = vmatpush3.msra.mxu0 %v1864_v0  ;;  %v1869_v33 = vld [vmem:[#allocation22_spill] sm:$0xff] }
  0xde   :  { %1094 = vmatpush3.msra.mxu1 %v1511_v58  ;;  %1052 = vmatprep.subr.mxu0 %v1865_v56  ;;  %v1870_v56 = vld [vmem:[#allocation23_spill] sm:$0xff] }
  0xdf   :  { %1095 = vmatprep.subr.mxu1 %v1523_v29  ;;  %1053 = vmatpush3.msra.mxu0 %v1866_v51  ;;  %v1871_v51 = vld [vmem:[#allocation24_spill] sm:$0xff] }
  0xe0   :  { %1096 = vmatpush3.msra.mxu1 %v1533_v24  ;;  %1054 = vmatprep.subr.mxu0 %v1867_v3 }
  0xe1   :  { %667 = vmatmul.mubr.f32.vlgmr.msra.gmra.mxu1 %v1868_v30  ;;  %1135 = vmatprep.subr.mxu1 %v1256_v5  ;;  %v1872_v5 = vand.u32 4294901760, %v1267_v16  ;;  %v1876_v16 = vand.u32 4294901760, %v1288_v25  ;;  %v1883_v25 = vand.u32 4294901760, %v1361_v12 }
  0xe2   :  { %1055 = vmatpush3.msra.mxu0 %v1869_v33  ;;  %1136 = vmatpush3.msra.mxu1 %v1258_v9  ;;  %v1873_v9 = vand.u32 4294901760, %v1275_v20  ;;  %v1879_v20 = vand.u32 4294901760, %v1309_v35  ;;  %v1887_v35 = vand.u32 4294901760, %v1856_v50 }
  0xe3   :  { %937 = vmatprep.mubr.f32.mxu1 %v1584_v46  ;;  %1056 = vmatprep.subr.mxu0 %v1870_v56 }
  0xe4   :  { %1137 = vmatprep.subr.mxu1 %v1260_v10  ;;  %1057 = vmatpush3.msra.mxu0 %v1871_v51  ;;  %v1874_v10 = vand.u32 4294901760, %v1278_v21  ;;  %v1880_v21 = vand.u32 4294901760, %v1347_v1  ;;  %v1893_v1 = vld [vmem:[#allocation21_spill] sm:$0xff] }
  0xe5   :  { %1138 = vmatpush3.msra.mxu1 %v1262_v11  ;;  %1058 = vmatprep.subr.mxu0 %v1528_v63  ;;  %v1875_v11 = vand.u32 4294901760, %v1281_v22  ;;  %v1881_v22 = vand.u32 4294901760, %v1355_v7 }
  0xe6   :  { %1139 = vmatprep.subr.mxu1 %v1269_v17  ;;  %1059 = vmatpush3.msra.mxu0 %v1531_v34  ;;  %v1877_v17 = vand.u32 4294901760, %v1291_v26  ;;  %v1884_v26 = vand.u32 4294901760, %v1368_v15  ;;  %v1901_v15 = vand.u32 4294901760, %v1869_v33 }
  0xe7   :  { %1140 = vmatpush3.msra.mxu1 %v1271_v18  ;;  %1060 = vmatprep.subr.mxu0 %v1540_v37  ;;  %v1878_v18 = vand.u32 4294901760, %v1300_v31  ;;  %v1886_v31 = vand.u32 4294901760, %v1854_v47 }
  0xe8   :  { %1141 = vmatprep.subr.mxu1 %v1283_v23  ;;  %1061 = vmatpush3.msra.mxu0 %v1549_v59  ;;  %v1882_v23 = vand.u32 4294901760, %v1358_v8  ;;  %v1897_v8 = vld [vmem:[#allocation18_spill] sm:$0xff] }
  0xe9   :  { %1142 = vmatpush3.msra.mxu1 %v1293_v27  ;;  %559 = vmatmul.mubr.f32.vlgmr.msra.gmra.mxu0 %v1587_v28  ;;  %v1885_v27 = vand.u32 4294901760, %v1371_v19  ;;  %v1898_v12 = vand.u32 4294901760, %v1897_v8  ;;  %v1902_v19 = vand.u32 4294901760, %v1870_v56 }
  0xea   :  { %1100 = vmatprep.subr.mxu0 %v1872_v5  ;;  %1143 = vmatprep.subr.mxu1 %v1338_v57  ;;  %v1889_v57 = vand.u32 4294901760, %v1858_v39 }
  0xeb   :  { %1101 = vmatpush3.msra.mxu0 %v1873_v9  ;;  %833 = vmatprep.mubr.f32.mxu0 %v1584_v46 }
  0xec   :  { %1144 = vmatpush3.msra.mxu1 %v1340_v60  ;;  %1102 = vmatprep.subr.mxu0 %v1874_v10  ;;  %v1890_v60 = vand.u32 4294901760, %v1860_v52 }
  0xed   :  { %1145 = vmatprep.subr.mxu1 %v1342_v61  ;;  %1103 = vmatpush3.msra.mxu0 %v1875_v11  ;;  %v1891_v61 = vand.u32 4294901760, %v1861_v45 }
  0xee   :  { %1146 = vmatpush3.msra.mxu1 %v1344_v62  ;;  %1104 = vmatprep.subr.mxu0 %v1876_v16  ;;  %v1892_v62 = vand.u32 4294901760, %v1862_v4 }
  0xef   :  { %1147 = vmatprep.subr.mxu1 %v1349_v2  ;;  %1105 = vmatpush3.msra.mxu0 %v1877_v17  ;;  %v1894_v2 = vand.u32 4294901760, %v1864_v0 }
  0xf0   :  { %1148 = vmatpush3.msra.mxu1 %v1351_v6  ;;  %1106 = vmatprep.subr.mxu0 %v1878_v18  ;;  %v1895_v6 = vld [vmem:[#allocation17_spill] sm:$0xff] }
  0xf1   :  { %1149 = vmatprep.subr.mxu1 %v1363_v13  ;;  %1107 = vmatpush3.msra.mxu0 %v1879_v20  ;;  %v1896_v7 = vand.u32 4294901760, %v1895_v6  ;;  %v1899_v13 = vand.u32 4294901760, %v1867_v3 }
  0xf2   :  { %1150 = vmatpush3.msra.mxu1 %v1373_v32  ;;  %1108 = vmatprep.subr.mxu0 %v1880_v21  ;;  %v1903_v32 = vand.u32 4294901760, %v1871_v51 }
  0xf3   :  { %1151 = vmatprep.subr.mxu1 %v1418_v14  ;;  %1109 = vmatpush3.msra.mxu0 %v1881_v22  ;;  %v1900_v14 = vld [vmem:[#allocation25_spill] sm:$0xff] }
  0xf4   :  { %1152 = vmatpush3.msra.mxu1 %v1420_v48  ;;  %1110 = vmatprep.subr.mxu0 %v1882_v23  ;;  %v1907_v48 = vand.u32 4294901760, %v1549_v59 }
  0xf5   :  { %1153 = vmatprep.subr.mxu1 %v1422_v44  ;;  %1111 = vmatpush3.msra.mxu0 %v1883_v25  ;;  %v1888_v44 = vand.u32 4294901760, %v1857_v43 }
  0xf6   :  { %1154 = vmatpush3.msra.mxu1 %v1424_v49  ;;  %1112 = vmatprep.subr.mxu0 %v1884_v26  ;;  %v1905_v49 = vand.u32 4294901760, %v1531_v34 }
  0xf7   :  { %1155 = vmatprep.subr.mxu1 %v1429_v53  ;;  %1113 = vmatpush3.msra.mxu0 %v1885_v27  ;;  %v1230_v53 = vmov 2  }
  0xf8   :  { %1156 = vmatpush3.msra.mxu1 %v1431_v54  ;;  %1114 = vmatprep.subr.mxu0 %v1886_v31  ;;  %v1906_v54 = vand.u32 4294901760, %v1540_v37 }
  0xf9   :  { %1157 = vmatprep.subr.mxu1 %v1855_v42  ;;  %1115 = vmatpush3.msra.mxu0 %v1887_v35 }
  0xfa   :  { %1158 = vmatpush3.msra.mxu1 %v1453_v55  ;;  %1116 = vmatprep.subr.mxu0 %v1888_v44 }
  0xfb   :  { %1159 = vmatprep.subr.mxu1 %v1498_v40  ;;  %1117 = vmatpush3.msra.mxu0 %v1889_v57  ;;  %v1904_v40 = vand.u32 4294901760, %v1528_v63 }
  0xfc   :  { %1160 = vmatpush3.msra.mxu1 %v1859_v41  ;;  %1118 = vmatprep.subr.mxu0 %v1890_v60 }
  0xfd   :  { %1161 = vmatprep.subr.mxu1 %v1502_v36  ;;  %1119 = vmatpush3.msra.mxu0 %v1891_v61 }
  0xfe   :  { %1162 = vmatpush3.msra.mxu1 %v1504_v38  ;;  %1120 = vmatprep.subr.mxu0 %v1892_v62 }
  0xff   :  { %1163 = vmatprep.subr.mxu1 %v1893_v1  ;;  %1121 = vmatpush3.msra.mxu0 %v1894_v2 }
 0x100   :  { %1164 = vmatpush3.msra.mxu1 %v1511_v58  ;;  %1122 = vmatprep.subr.mxu0 %v1896_v7 }
 0x101   :  { %1165 = vmatprep.subr.mxu1 %v1523_v29  ;;  %1123 = vmatpush3.msra.mxu0 %v1898_v12 }
 0x102   :  { %1166 = vmatpush3.msra.mxu1 %v1533_v24  ;;  %1124 = vmatprep.subr.mxu0 %v1899_v13 }
 0x103   :  { %939 = vmatmul.mubr.f32.vlgmr.msra.gmra.mxu1 %v1900_v14  ;;  %1125 = vmatpush3.msra.mxu0 %v1901_v15 }
 0x104   :  { %1126 = vmatprep.subr.mxu0 %v1902_v19  ;;  %1175 = vset.pattern.permute.xlu0 %v1230_v53 }
 0x105   :  { %1127 = vmatpush3.msra.mxu0 %v1903_v32 }
 0x106   :  { %1128 = vmatprep.subr.mxu0 %v1904_v40 }
 0x107   :  { %1129 = vmatpush3.msra.mxu0 %v1905_v49 }
 0x108   :  { %1130 = vmatprep.subr.mxu0 %v1906_v54 }
 0x109   :  { %1131 = vmatpush3.msra.mxu0 %v1907_v48 }
 0x10a   :  { %835 = vmatmul.mubr.f32.vlgmr.msra.gmra.mxu0 %v1900_v14 }
 0x180   :  { %v1027_v55 = vpop.f32.mrf.mxu1 }
 0x182   :  { %v1028_v29 = vpop.f32.mrf.mxu1 }
 0x183   :  { %v1029_v34 = vadd.f32 %v1028_v29, %v1027_v55 }
 0x188   :  { %v992_v36 = vpop.f32.mrf.mxu0 }
 0x18a   :  { %v993_v58 = vpop.f32.mrf.mxu0 }
 0x18b   :  { %v994_v30 = vadd.f32 %v993_v58, %v992_v36 }
 0x18d   :  { %v423_v37 = vadd.f32 %v1029_v34, %v994_v30 }
 0x1a1   :  { %v1097_v63 = vpop.f32.mrf.mxu1 }
 0x1a3   :  { %v1098_v28 = vpop.f32.mrf.mxu1 }
 0x1a4   :  { %v1099_v42 = vadd.f32 %v1098_v28, %v1097_v63 }
 0x1a9   :  { %v1062_v38 = vpop.f32.mrf.mxu0 }
 0x1ab   :  { %v1063_v24 = vpop.f32.mrf.mxu0 }
 0x1ac   :  { %v1064_v46 = vadd.f32 %v1063_v24, %v1062_v38 }
 0x1ae   :  { %v561_v47 = vadd.f32 %v1064_v46, %v423_v37 }
 0x1b0   :  { %v669_v39 = vadd.f32 %v1099_v42, %v561_v47 }
 0x1c3   :  { %v1167_v3 = vpop.f32.mrf.mxu1 }
 0x1c5   :  { %v1168_v50 = vpop.f32.mrf.mxu1 }
 0x1c6   :  { %v1169_v52 = vadd.f32 %v1168_v50, %v1167_v3 }
 0x1ca   :  { %v1132_v59 = vpop.f32.mrf.mxu0 }
 0x1cc   :  { %v1133_v43 = vpop.f32.mrf.mxu0 }
 0x1cd   :  { %v1134_v41 = vadd.f32 %v1133_v43, %v1132_v59 }
 0x1cf   :  { %v837_v45 = vadd.f32 %v1134_v41, %v669_v39 }
 0x1d1   :  { %v941_v4 = vadd.f32 %v1169_v52, %v837_v45 }
 0x1d3   :  { %1180 = vrcp.f32 %v941_v4 }
 0x1e0   :  { %v1181_v33 = vpop.eup %1180 }
 0x1e1   :  { %948 = vperm.xlu0 %1175, %v1181_v33  }
 0x25c   :  { %v949_v0 = vpop.permute.xlu0 %948 }
 0x25d   :  { %v951_v56 = vmul.f32 %v949_v0, %v941_v4 }
 0x25f   :  { %953 = vst.msk [vmem:[%s1766_s2] sm:$0xff] %vm952_vm0, %v951_v56 }
 0x260   :  { %958 = vsyncpa [#allocation3], 1 }
 0x261   :  { %959 = vsyncpa [#allocation5], 1 }

</bundles_post_ra>
